<compile_context>
chip_gen: v7x
topology: tpu7x:2x2x1
jax: 0.10.0
libtpu: 0.0.40
codegen_flags: <defaults>
</compile_context>

<pallas_src>
import functools

import jax
import jax.numpy as jnp
from jax.experimental import pallas as pl
from jax.experimental.pallas import tpu as pltpu

N_VERTICES = 34  # fixed by the module's reshape((-1, 34, 1))


# ----------------------------------------------------------------------------
# Fused kernel: out = (1/deg) * G @ (V @ W)  for a slab of TB batch elements.
# ----------------------------------------------------------------------------
def _gcn_fused_kernel(v_ref, g_ref, w_ref, o_ref, *, avg: bool):
    v = v_ref[...]        # (TB, N, F_in)
    g = g_ref[...]        # (TB, N, N)
    w = w_ref[...]        # (TB, F_in, F_out)  replicated weight, VMEM-resident

    # Hoisted linear: (D^-1 G V) W == D^-1 G (V W); f32 MXU accumulation.
    x = jnp.einsum("bnk,bkf->bnf", v, w, preferred_element_type=jnp.float32)
    if g.dtype != jnp.float32:
        # keep the second matmul in the caller's (e.g. bf16) precision on the MXU
        x = x.astype(g.dtype)
    h = jnp.einsum("bij,bjf->bif", g, x, preferred_element_type=jnp.float32)

    if avg:
        # torch.sum(g_mat, dim=1): per-column (in-degree) sums, reduced directly
        # from the loaded slab (no f32 copy of g). Approx reciprocal -> EUP slot.
        # NOTE: a zero-degree column gives inf, same as the torch module.
        col_sum = jnp.sum(g, axis=1)                                  # (TB, N)
        inv_deg = pl.reciprocal(col_sum.astype(jnp.float32), approx=True)
        h = h * inv_deg[:, :, None]

    o_ref[...] = h.astype(o_ref.dtype)


# ----------------------------------------------------------------------------
# Wrapper helpers
# ----------------------------------------------------------------------------
def _round_up(x, m):
    return ((x + m - 1) // m) * m


def _tpu_vmem_bytes():
    try:
        info = pltpu.get_tpu_info()
        v = getattr(info, "vmem_capacity_bytes", None)
        if v:
            return int(v)
    except Exception:
        pass
    return 64 << 20  # conservative fallback (v7x-sized VMEM)


def _largest_divisor_leq(n, cap):
    cap = max(1, min(n, cap))
    for d in range(cap, 0, -1):
        if n % d == 0:
            return d
    return 1


# ----------------------------------------------------------------------------
# Wrapper
# ----------------------------------------------------------------------------
def gcn_forward(vertices, g_mat, weight_t, *, avg: bool = False,
                out_dtype=None, batch_block=None):
    """Pallas GCN forward.

    vertices: (B, N, F_in)   (float32 or bfloat16 — used as given, no wrapper cast)
    g_mat:    (B, N, N)
    weight_t: (F_in, F_out)  transpose of the torch Linear weight (bias=False)
    returns:  (B, N, F_out)  dtype = vertices.dtype unless out_dtype is given
    """
    B, N, F_in = vertices.shape
    F_out = weight_t.shape[1]
    assert g_mat.shape == (B, N, N), g_mat.shape
    assert weight_t.shape == (F_in, F_out), weight_t.shape
    if out_dtype is None:
        out_dtype = vertices.dtype

    # ---- chip-aware slab sizing ------------------------------------------------
    phys_vmem = _tpu_vmem_bytes()
    dual_tc = phys_vmem <= (64 << 20)          # v7x proxy: 64 MiB VMEM, 2 TensorCores

    def esz(dt):
        return jnp.dtype(dt).itemsize

    # padded VMEM bytes per batch element per pipeline buffer
    per_b_buf = (_round_up(N, 8) * _round_up(N, 128) * esz(g_mat.dtype)        # g tile
                 + _round_up(N, 8) * _round_up(F_in, 128) * esz(vertices.dtype)  # v tile
                 + _round_up(N, 8) * _round_up(F_out, 128) * esz(out_dtype)      # out tile
                 + _round_up(F_in, 8) * _round_up(F_out, 128) * esz(vertices.dtype))  # weight
    # rough f32 live intermediates (x, h, loaded value copies) per batch element
    per_b_live = 6 * _round_up(N, 8) * 128 * 4
    per_b = 2 * per_b_buf + per_b_live         # double-buffered pipeline + live values

    budget = phys_vmem // 2
    cap = 128 if dual_tc else 256
    cap = min(cap, max(1, budget // max(per_b, 1)))
    if batch_block is not None:
        cap = min(cap, max(1, int(batch_block)))
    if dual_tc and B >= 2:
        cap = min(cap, max(1, B // 2))         # keep >= 2 grid steps for both TCs
    tb = _largest_divisor_leq(B, cap)
    grid = (B // tb,)

    vmem_limit = max(32 << 20, tb * per_b + (16 << 20))
    vmem_limit = int(min(vmem_limit, phys_vmem - (8 << 20)))

    # ---- resident, pre-broadcast weight (tiny; constant block index => one DMA) -
    w_rep = jnp.broadcast_to(weight_t.astype(vertices.dtype)[None],
                             (tb, F_in, F_out))

    flops = 2 * B * N * F_out * (F_in + N) + (2 * B * N * N if avg else 0)
    bytes_accessed = int(vertices.size * esz(vertices.dtype)
                         + g_mat.size * esz(g_mat.dtype)
                         + w_rep.size * esz(vertices.dtype)
                         + B * N * F_out * esz(out_dtype))

    kernel = functools.partial(_gcn_fused_kernel, avg=avg)
    out = pl.pallas_call(
        kernel,
        out_shape=jax.ShapeDtypeStruct((B, N, F_out), out_dtype),
        grid_spec=pltpu.PrefetchScalarGridSpec(
            num_scalar_prefetch=0,
            grid=grid,
            in_specs=[
                pl.BlockSpec((tb, N, F_in), lambda b: (b, 0, 0)),      # vertices slab
                pl.BlockSpec((tb, N, N), lambda b: (b, 0, 0)),         # g_mat slab
                pl.BlockSpec((tb, F_in, F_out), lambda b: (0, 0, 0)),  # resident weight
            ],
            out_specs=pl.BlockSpec((tb, N, F_out), lambda b: (b, 0, 0)),
        ),
        compiler_params=pltpu.CompilerParams(
            dimension_semantics=("parallel",),
            vmem_limit_bytes=vmem_limit,
        ),
        cost_estimate=pl.CostEstimate(
            flops=flops,
            transcendentals=(B * N if avg else 0),
            bytes_accessed=bytes_accessed,
        ),
    )(vertices, g_mat, w_rep)
    return out


def gcn_reference(vertices, g_mat, weight_t, *, avg: bool = False):
    hp = jax.lax.Precision.HIGHEST
    v32 = vertices.astype(jnp.float32)
    g32 = g_mat.astype(jnp.float32)
    w32 = weight_t.astype(jnp.float32)
    h = jnp.einsum("bij,bjf->bif", g32, v32, precision=hp)
    if avg:
        h = h / jnp.sum(g32, axis=1)[:, :, None]
    return jnp.einsum("bnf,fo->bno", h, w32, precision=hp)


if __name__ == "__main__":
    key = jax.random.PRNGKey(0)
    k_v, k_g, k_w = jax.random.split(key, 3)

    B = 8
    N = N_VERTICES        # 34, fixed by the module's reshape((-1, 34, 1))
    F_in = 32
    F_out = 16

    vertices = jax.random.normal(k_v, (B, N, F_in), dtype=jnp.float32)
    # non-negative adjacency-like matrix (keeps the avg-divisor well-defined)
    g_mat = jax.random.uniform(k_g, (B, N, N), dtype=jnp.float32) + 0.1
    # Deterministic "Linear(F_in, F_out, bias=False)" weight, pre-transposed to
    # (F_in, F_out); bias=False per the module defaults.
    weight_t = (jax.random.uniform(k_w, (F_in, F_out), dtype=jnp.float32) - 0.5) * (
        2.0 / jnp.sqrt(jnp.float32(F_in))
    )

    # f32 path, avg=False
    out = jax.block_until_ready(gcn_forward(vertices, g_mat, weight_t, avg=False))
    ref = gcn_reference(vertices, g_mat, weight_t, avg=False)
    assert out.shape == (B, N, F_out)
    assert jnp.allclose(out, ref, atol=5e-4, rtol=5e-4)

    # avg=True path (approx reciprocal on the EUP -> slightly looser tolerance)
    out_avg = jax.block_until_ready(gcn_forward(vertices, g_mat, weight_t, avg=True))
    ref_avg = gcn_reference(vertices, g_mat, weight_t, avg=True)
    assert jnp.allclose(out_avg, ref_avg, atol=1e-2, rtol=1e-2)

    # bf16 end-to-end path: caller passes bf16 arrays directly (no wrapper-side
    # cast => no extra HBM pass), halving DMA bytes of this memory-bound kernel.
    out_bf = jax.block_until_ready(gcn_forward(
        vertices.astype(jnp.bfloat16), g_mat.astype(jnp.bfloat16),
        weight_t.astype(jnp.bfloat16), avg=False))
    assert jnp.allclose(out_bf.astype(jnp.float32), ref, atol=1e-1, rtol=1e-1)

    print("KERNEL_OK")
</pallas_src>

<mosaic_0001>
module attributes {stable_mosaic.version = 11 : i64} {
  func.func @_gcn_fused_kernel(%arg0: i32, %arg1: memref<4x34x32xf32, #tpu.memory_space<vmem>>, %arg2: memref<4x34x34xf32, #tpu.memory_space<vmem>>, %arg3: memref<4x32x16xf32, #tpu.memory_space<vmem>>, %arg4: memref<4x34x16xf32, #tpu.memory_space<vmem>>) attributes {dimension_semantics = [#tpu.dimension_semantics<parallel>], iteration_bounds = array<i64: 2>, scalar_prefetch = 0 : i64, scratch_operands = 0 : i64, tpu.core_type = #tpu.core_type<tc>, window_params = [{transform_indices = @transform_0, window_bounds = array<i64: 4, 34, 32>}, {transform_indices = @transform_1, window_bounds = array<i64: 4, 34, 34>}, {pipeline_mode = #tpu.pipeline_mode<synchronous>, transform_indices = @transform_2, window_bounds = array<i64: 4, 32, 16>}, {transform_indices = @transform_3, window_bounds = array<i64: 4, 34, 16>}]} {
    %c0 = arith.constant 0 : index
    %c0_0 = arith.constant 0 : index
    %c0_1 = arith.constant 0 : index
    %0 = vector.load %arg1[%c0, %c0_0, %c0_1] : memref<4x34x32xf32, #tpu.memory_space<vmem>>, vector<4x34x32xf32>
    %c0_2 = arith.constant 0 : index
    %c0_3 = arith.constant 0 : index
    %c0_4 = arith.constant 0 : index
    %1 = vector.load %arg2[%c0_2, %c0_3, %c0_4] : memref<4x34x34xf32, #tpu.memory_space<vmem>>, vector<4x34x34xf32>
    %c0_5 = arith.constant 0 : index
    %c0_6 = arith.constant 0 : index
    %c0_7 = arith.constant 0 : index
    %2 = vector.load %arg3[%c0_5, %c0_6, %c0_7] : memref<4x32x16xf32, #tpu.memory_space<vmem>>, vector<4x32x16xf32>
    "tpu.trace_start"() <{level = 10 : i32, message = "bnk,bkf->bnf"}> : () -> ()
    %cst = arith.constant dense<0.000000e+00> : vector<4x34x16xf32>
    %3 = tpu.matmul %0, %2, %cst {dimension_numbers = #tpu.dot_dimension_numbers<[2], [1], [1], [2], [0, 0, 0, 1, 1, 2], [0], [0]>} : vector<4x34x32xf32>, vector<4x32x16xf32>, vector<4x34x16xf32> -> vector<4x34x16xf32>
    "tpu.trace_stop"() : () -> ()
    "tpu.trace_start"() <{level = 10 : i32, message = "bij,bjf->bif"}> : () -> ()
    %cst_8 = arith.constant dense<0.000000e+00> : vector<4x34x16xf32>
    %4 = tpu.matmul %1, %3, %cst_8 {dimension_numbers = #tpu.dot_dimension_numbers<[2], [1], [1], [2], [0, 0, 0, 1, 1, 2], [0], [0]>} : vector<4x34x34xf32>, vector<4x34x16xf32>, vector<4x34x16xf32> -> vector<4x34x16xf32>
    "tpu.trace_stop"() : () -> ()
    %c0_9 = arith.constant 0 : index
    %c0_10 = arith.constant 0 : index
    %c0_11 = arith.constant 0 : index
    %5 = vector.load %arg4[%c0_9, %c0_10, %c0_11] : memref<4x34x16xf32, #tpu.memory_space<vmem>>, vector<4x34x16xf32>
    tpu.vector_store %arg4[%c0_9, %c0_10, %c0_11], %4 {strides = array<i32>} : memref<4x34x16xf32, #tpu.memory_space<vmem>>, vector<4x34x16xf32>,
    return
  }
  func.func @transform_0(%arg0: i32) -> (i32, i32, i32) {
    %c0_i32 = arith.constant 0 : i32
    %c0_i32_0 = arith.constant 0 : i32
    %c0_i32_1 = arith.constant 0 : i32
    return %arg0, %c0_i32, %c0_i32_0 : i32, i32, i32
  }
  func.func @transform_1(%arg0: i32) -> (i32, i32, i32) {
    %c0_i32 = arith.constant 0 : i32
    %c0_i32_0 = arith.constant 0 : i32
    %c0_i32_1 = arith.constant 0 : i32
    return %arg0, %c0_i32, %c0_i32_0 : i32, i32, i32
  }
  func.func @transform_2(%arg0: i32) -> (i32, i32, i32) {
    %c0_i32 = arith.constant 0 : i32
    %c0_i32_0 = arith.constant 0 : i32
    %c0_i32_1 = arith.constant 0 : i32
    %c0_i32_2 = arith.constant 0 : i32
    return %c0_i32, %c0_i32_0, %c0_i32_1 : i32, i32, i32
  }
  func.func @transform_3(%arg0: i32) -> (i32, i32, i32) {
    %c0_i32 = arith.constant 0 : i32
    %c0_i32_0 = arith.constant 0 : i32
    %c0_i32_1 = arith.constant 0 : i32
    return %arg0, %c0_i32, %c0_i32_0 : i32, i32, i32
  }
}

</mosaic_0001>

<bundles_post_ra>
// kernel: tpu_custom_call.1
= control target key start
LH: loop header
LB: loop body
LE: loop exit
PB: predicated region body
PF: predicated region fallthrough
CT: control target
= control target key end

     0   :  { %s1623_s12 = smov 0   ;;  %s1926_s0 = inlined_call_operand.vmem [shape: f32[8,34,32], index: 0, kind: input, shape index: {}]   ;;  %s1927_s1 = inlined_call_operand.vmem [shape: f32[8,34,34], index: 1, kind: input, shape index: {}]   ;;  %s1928_s2 = inlined_call_operand.vmem [shape: f32[4,32,16], index: 2, kind: input, shape index: {}]   ;;  %s1929_s3 = inlined_call_operand.vmem [shape: f32[8,34,16], index: 3, kind: output, shape index: {}]  }
   0x1 LB: > { %s1207_s13 = sadd.s32 4294967295, %s1598_s12   ;;  %p1211_p0 = scmp.ge.s32.totalorder %s1598_s12, 1  ;;  %s1598_s12 = sphi %s1623_s12, %s13_s12  }
   0x2   : > { %p151_p1 = scmp.lt.s32.totalorder %s1598_s12, 3 }
   0x4   : > { %p152_p2 = pnand %p1211_p0, %p151_p1 }
   0x5   : > { %v244_v0 = vld [vmem:[%s1928_s2] sm:$0xff] (!%p152_p2)  ;;  %v245_v1 = vld [vmem:[%s1928_s2 + $0x8] sm:$0xff] (!%p152_p2)  ;;  %v1600_v3 = vmov (!%p152_p2), 0.0|0.0   ;;  %v246_v6 = vld [vmem:[%s1928_s2 + $0x10] sm:$0xff] (!%p152_p2)  ;;  %s1212_s26 = sshll.u32 (!%p152_p2), %s1207_s13, 2  ;;  %vm1601_vm0 = vmmov (!%p152_p2), 0  }
   0x6   : > { %155 = sbr.rel (%p152_p2) target bundleno = 499 (0x1f3), region = 32  ;;  %v248_v2 = vld [vmem:[%s1928_s2 + $0x20] sm:$0xff] (!%p152_p2)  ;;  %1532 = vmatprep.subr.bf16.mxu0 (!%p152_p2), %v1600_v3  ;;  %1538 = vmatprep.subr.bf16.mxu1 (!%p152_p2), %v1600_v3  ;;  %v1533_v4 = vpack.c.bf16 (!%p152_p2), %v245_v1, %v244_v0  ;;  %v249_v5 = vld [vmem:[%s1928_s2 + $0x28] sm:$0xff] (!%p152_p2)  ;;  %v247_v7 = vld [vmem:[%s1928_s2 + $0x18] sm:$0xff] (!%p152_p2)  ;;  %v1602_v11 = vmov (!%p152_p2), 0.0   ;;  %p184_p3 = scmp.lt.s32.totalorder (!%p152_p2), %s1212_s26, 7 }
   0x7   : > { %v1539_v8 = vpack.c.bf16 (!%p152_p2), %v249_v5, %v248_v2  ;;  %v250_v9 = vld [vmem:[%s1928_s2 + $0x30] sm:$0xff] (!%p152_p2)  ;;  %v251_v10 = vld [vmem:[%s1928_s2 + $0x38] sm:$0xff] (!%p152_p2)  ;;  %1348 = vmatprep.mubr.msk.f32.mxu0 (!%p152_p2), %vm1601_vm0, %v1602_v11  ;;  %1371 = vmatprep.mubr.msk.f32.mxu1 (!%p152_p2), %vm1601_vm0, %v1602_v11  ;;  %v1536_v12 = vpack.c.bf16 (!%p152_p2), %v247_v7, %v246_v6  ;;  %v252_v14 = vld [vmem:[%s1928_s2 + $0x40] sm:$0xff] (!%p152_p2)  ;;  %vm260_vm1 = vcmask (!%p152_p2), 261120   ;;  %vm697_vm2 = vcmask (!%p152_p2), 1041408  }
   0x8   : > { %1534 = vmatpush3.bf16.msra.mxu0 (!%p152_p2), %v1533_v4  ;;  %v1542_v13 = vpack.c.bf16 (!%p152_p2), %v251_v10, %v250_v9  ;;  %v253_v15 = vld [vmem:[%s1928_s2 + $0x48] sm:$0xff] (!%p152_p2)  ;;  %v256_v16 = vld [vmem:[%s1928_s2 + $0x60] sm:$0xff] (!%p152_p2)  ;;  %v254_v19 = vld [vmem:[%s1928_s2 + $0x50] sm:$0xff] (!%p152_p2)  ;;  %vm681_vm3 = vcmask (!%p152_p2), 277504   ;;  %vm1115_vm4 = vcmask (!%p152_p2), 130048   ;;  %vm1120_vm5 = vcmask (!%p152_p2), 123904  }
   0x9   : > { %1540 = vmatpush3.bf16.msra.mxu1 (!%p152_p2), %v1539_v8  ;;  %1535 = vmatprep.subr.bf16.mxu0 (!%p152_p2), %v1600_v3  ;;  %v257_v17 = vld [vmem:[%s1928_s2 + $0x68] sm:$0xff] (!%p152_p2)  ;;  %v1545_v18 = vpack.c.bf16 (!%p152_p2), %v253_v15, %v252_v14  ;;  %v255_v23 = vld [vmem:[%s1928_s2 + $0x58] sm:$0xff] (!%p152_p2)  ;;  %v258_v24 = vld [vmem:[%s1928_s2 + $0x70] sm:$0xff] (!%p152_p2) }
   0xa   : > { %1541 = vmatprep.subr.bf16.mxu1 (!%p152_p2), %v1600_v3  ;;  %v1551_v22 = vpack.c.bf16 (!%p152_p2), %v257_v17, %v256_v16  ;;  %v259_v25 = vld [vmem:[%s1928_s2 + $0x78] sm:$0xff] (!%p152_p2)  ;;  %v1548_v28 = vpack.c.bf16 (!%p152_p2), %v255_v23, %v254_v19 }
   0xb   : > { %v1554_v29 = vpack.c.bf16 (!%p152_p2), %v259_v25, %v258_v24 }
   0xc   : > { %1537 = vmatpush3.bf16.msra.mxu0 (!%p152_p2), %v1536_v12 }
   0xd   : > { %s1931_s26 = smov (!%p184_p3, %s1212_s26), 7  ;;  %1543 = vmatpush3.bf16.msra.mxu1 %v1542_v13  ;;  %1544 = vmatprep.subr.bf16.mxu0 %v1600_v3 }
   0xe   : > { %s1669_s8 = smul.u32 40, %s1931_s26  ;;  %1550 = vmatprep.subr.bf16.mxu1 %v1600_v3 }
  0x10   : > { %s1681_s16 = scalar_lea.vmem %s1926_s0, %s1669_s8  ;;  %s1787_s27 = scalar_lea.vmem %s1927_s1, %s1669_s8 }
  0x11   : > { %v204_v20 = vld [vmem:[%s1681_s16] sm:$0xff]  ;;  %v209_v21 = vld [vmem:[%s1681_s16 + $0x28] sm:$0xff]  ;;  %v210_v27 = vld [vmem:[%s1681_s16 + $0x30] sm:$0xff]  ;;  %s1881_s30 = scalar_lea.vmem %s1929_s3, %s1669_s8 }
  0x12   : > { %1349 = vmatmul.mubr.msk.f32.vlgmr.msra.gmra.mrb[0].mxu0 %vm260_vm1, %v204_v20  ;;  %1372 = vmatmul.mubr.msk.f32.vlgmr.msra.gmra.mrb[0].mxu1 %vm260_vm1, %v209_v21  ;;  %v205_v26 = vld [vmem:[%s1681_s16 + $0x8] sm:$0xff]  ;;  %v206_v30 = vld [vmem:[%s1681_s16 + $0x10] sm:$0xff]  ;;  %v211_v31 = vld [vmem:[%s1681_s16 + $0x38] sm:$0xff] }
  0x13   : > { %1351 = vmatprep.mubr.msk.f32.mxu0 %vm1601_vm0, %v1602_v11  ;;  %1374 = vmatprep.mubr.msk.f32.mxu1 %vm1601_vm0, %v1602_v11  ;;  %v207_v32 = vld [vmem:[%s1681_s16 + $0x18] sm:$0xff]  ;;  %v212_v33 = vld [vmem:[%s1681_s16 + $0x40] sm:$0xff]  ;;  %v213_v35 = vld [vmem:[%s1681_s16 + $0x48] sm:$0x3] }
  0x14   : > { %1546 = vmatpush3.bf16.msra.mxu0 %v1545_v18  ;;  %1552 = vmatpush3.bf16.msra.mxu1 %v1551_v22  ;;  %v208_v34 = vld [vmem:[%s1681_s16 + $0x20] sm:$0x3]  ;;  %v214_v36 = vld [vmem:[%s1681_s16 + $0x50] sm:$0xff]  ;;  %v219_v37 = vld [vmem:[%s1681_s16 + $0x78] sm:$0xff] }
  0x15   : > { %1547 = vmatprep.subr.bf16.mxu0 %v1600_v3  ;;  %1553 = vmatprep.subr.bf16.mxu1 %v1600_v3  ;;  %v215_v38 = vld [vmem:[%s1681_s16 + $0x58] sm:$0xff]  ;;  %v220_v39 = vld [vmem:[%s1681_s16 + $0x80] sm:$0xff]  ;;  %v221_v41 = vld [vmem:[%s1681_s16 + $0x88] sm:$0xff] }
  0x16   : > { %1352 = vmatmul.mubr.msk.f32.gmra.mrb[2].mxu0 %vm260_vm1, %v205_v26  ;;  %1375 = vmatmul.mubr.msk.f32.gmra.mrb[2].mxu1 %vm260_vm1, %v210_v27  ;;  %v216_v40 = vld [vmem:[%s1681_s16 + $0x60] sm:$0xff]  ;;  %v217_v42 = vld [vmem:[%s1681_s16 + $0x68] sm:$0xff]  ;;  %v222_v43 = vld [vmem:[%s1681_s16 + $0x90] sm:$0xff] }
  0x17   : > { %1354 = vmatprep.mubr.msk.f32.mxu0 %vm1601_vm0, %v1602_v11  ;;  %1377 = vmatprep.mubr.msk.f32.mxu1 %vm1601_vm0, %v1602_v11  ;;  %v218_v44 = vld [vmem:[%s1681_s16 + $0x70] sm:$0x3]  ;;  %v223_v45 = vld [vmem:[%s1681_s16 + $0x98] sm:$0x3]  ;;  %v224_v7 = vld [vmem:[%s1787_s27] sm:$0xff] }
  0x18   : > { %1549 = vmatpush3.bf16.msra.mxu0 %v1548_v28  ;;  %1555 = vmatpush3.bf16.msra.mxu1 %v1554_v29  ;;  %v229_v8 = vld [vmem:[%s1787_s27 + $0x28] sm:$0xff]  ;;  %v230_v15 = vld [vmem:[%s1787_s27 + $0x30] sm:$0xff]  ;;  %v231_v23 = vld [vmem:[%s1787_s27 + $0x38] sm:$0xff] }
  0x19   : > { %1556 = vmatprep.subr.bf16.mxu0 %v1600_v3  ;;  %1562 = vmatprep.subr.bf16.mxu1 %v1600_v3  ;;  %v225_v14 = vld [vmem:[%s1787_s27 + $0x8] sm:$0xff]  ;;  %v226_v22 = vld [vmem:[%s1787_s27 + $0x10] sm:$0xff]  ;;  %v227_v28 = vld [vmem:[%s1787_s27 + $0x18] sm:$0xff] }
  0x1a   : > { %1355 = vmatmul.mubr.msk.f32.gmra.mrb[4].mxu0 %vm260_vm1, %v206_v30  ;;  %1378 = vmatmul.mubr.msk.f32.gmra.mrb[4].mxu1 %vm260_vm1, %v211_v31  ;;  %v232_v29 = vld [vmem:[%s1787_s27 + $0x40] sm:$0xff] }
  0x1b   : > { %1357 = vmatprep.mubr.msk.f32.mxu0 %vm1601_vm0, %v1602_v11  ;;  %1380 = vmatprep.mubr.msk.f32.mxu1 %vm1601_vm0, %v1602_v11 }
  0x1e   : > { %1358 = vmatmul.mubr.msk.f32.gmra.mrb[6].mxu0 %vm260_vm1, %v207_v32  ;;  %1381 = vmatmul.mubr.msk.f32.gmra.mrb[6].mxu1 %vm260_vm1, %v212_v33 }
  0x1f   : > { %1360 = vmatprep.mubr.msk.f32.mxu0 %vm1601_vm0, %v1602_v11  ;;  %1383 = vmatprep.mubr.msk.f32.mxu1 %vm1601_vm0, %v1602_v11 }
  0x22   : > { %1361 = vmatmul.mubr.msk.f32.gmra.mrb[8].mxu0 %vm260_vm1, %v208_v34  ;;  %1384 = vmatmul.mubr.msk.f32.gmra.mrb[8].mxu1 %vm260_vm1, %v213_v35  ;;  %v228_v35 = vld [vmem:[%s1787_s27 + $0x20] sm:$0x3] }
  0x23   : > { %1394 = vmatprep.mubr.msk.f32.mxu0 %vm1601_vm0, %v1602_v11  ;;  %1417 = vmatprep.mubr.msk.f32.mxu1 %vm1601_vm0, %v1602_v11 }
  0x26   : > { %1395 = vmatmul.mubr.msk.f32.vlgmr.msra.gmra.mrb[10].mxu0 %vm260_vm1, %v214_v36  ;;  %1418 = vmatmul.mubr.msk.f32.vlgmr.msra.gmra.mrb[10].mxu1 %vm260_vm1, %v219_v37  ;;  %v233_v36 = vld [vmem:[%s1787_s27 + $0x48] sm:$0x3] }
  0x27   : > { %1397 = vmatprep.mubr.msk.f32.mxu0 %vm1601_vm0, %v1602_v11  ;;  %1420 = vmatprep.mubr.msk.f32.mxu1 %vm1601_vm0, %v1602_v11 }
  0x2a   : > { %1398 = vmatmul.mubr.msk.f32.gmra.mrb[12].mxu0 %vm260_vm1, %v215_v38  ;;  %1421 = vmatmul.mubr.msk.f32.gmra.mrb[12].mxu1 %vm260_vm1, %v220_v39 }
  0x2b   : > { %1400 = vmatprep.mubr.msk.f32.mxu0 %vm1601_vm0, %v1602_v11  ;;  %1423 = vmatprep.mubr.msk.f32.mxu1 %vm1601_vm0, %v1602_v11 }
  0x2e   : > { %1401 = vmatmul.mubr.msk.f32.gmra.mrb[14].mxu0 %vm260_vm1, %v216_v40  ;;  %1424 = vmatmul.mubr.msk.f32.gmra.mrb[14].mxu1 %vm260_vm1, %v221_v41  ;;  %v234_v41 = vld [vmem:[%s1787_s27 + $0x50] sm:$0xff] }
  0x2f   : > { %1403 = vmatprep.mubr.msk.f32.mxu0 %vm1601_vm0, %v1602_v11  ;;  %1426 = vmatprep.mubr.msk.f32.mxu1 %vm1601_vm0, %v1602_v11 }
  0x32   : > { %1404 = vmatmul.mubr.msk.f32.gmra.mrb[16].mxu0 %vm260_vm1, %v217_v42  ;;  %1427 = vmatmul.mubr.msk.f32.gmra.mrb[16].mxu1 %vm260_vm1, %v222_v43  ;;  %v239_v42 = vld [vmem:[%s1787_s27 + $0x78] sm:$0xff] }
  0x33   : > { %1406 = vmatprep.mubr.msk.f32.mxu0 %vm1601_vm0, %v1602_v11  ;;  %1429 = vmatprep.mubr.msk.f32.mxu1 %vm1601_vm0, %v1602_v11  ;;  %v235_v43 = vld [vmem:[%s1787_s27 + $0x58] sm:$0xff] }
  0x36   : > { %1407 = vmatmul.mubr.msk.f32.gmra.mrb[18].mxu0 %vm260_vm1, %v218_v44  ;;  %1430 = vmatmul.mubr.msk.f32.gmra.mrb[18].mxu1 %vm260_vm1, %v223_v45  ;;  %v240_v44 = vld [vmem:[%s1787_s27 + $0x80] sm:$0xff] }
  0x37   : > { %1442 = vmatprep.mubr.msk.f32.mxu0 %vm1601_vm0, %v1602_v11  ;;  %1467 = vmatprep.mubr.msk.f32.mxu1 %vm1601_vm0, %v1602_v11  ;;  %v236_v45 = vld [vmem:[%s1787_s27 + $0x60] sm:$0xff] }
  0xe5   : > { %v342_v46 = vpop.f32.mrb[0].mxu0  ;;  %v447_v47 = vpop.f32.mrb[0].mxu1 }
  0xe6   : > { %v1350_v48 = vpop.f32.mrb[1].mxu0  ;;  %v1373_v49 = vpop.f32.mrb[1].mxu1 }
  0xe7   : > { %v242_v48 = vld [vmem:[%s1787_s27 + $0x90] sm:$0xff] }
  0xe8   : > { %v238_v49 = vld [vmem:[%s1787_s27 + $0x70] sm:$0x3] }
  0xe9   : > { %v347_v50 = vpop.f32.mrb[2].mxu0  ;;  %v452_v52 = vpop.f32.mrb[2].mxu1 }
  0xea   : > { %v1557_v51 = vpack.c.bf16 %v347_v50, %v342_v46  ;;  %v1353_v53 = vpop.f32.mrb[3].mxu0  ;;  %v1563_v54 = vpack.c.bf16 %v452_v52, %v447_v47  ;;  %v1376_v55 = vpop.f32.mrb[3].mxu1  ;;  %v241_v46 = vld [vmem:[%s1787_s27 + $0x88] sm:$0xff]  ;;  %v243_v50 = vld [vmem:[%s1787_s27 + $0x98] sm:$0x3] }
  0xeb   : > { %v237_v47 = vld [vmem:[%s1787_s27 + $0x68] sm:$0xff] }
  0xec   : > { %1558 = vmatpush3.bf16.msra.mxu0 %v1557_v51  ;;  %1564 = vmatpush3.bf16.msra.mxu1 %v1563_v54 }
  0xed   : > { %v352_v56 = vpop.f32.mrb[4].mxu0  ;;  %1559 = vmatprep.subr.bf16.mxu0 %v1600_v3  ;;  %v457_v57 = vpop.f32.mrb[4].mxu1  ;;  %1565 = vmatprep.subr.bf16.mxu1 %v1600_v3 }
  0xee   : > { %v1356_v58 = vpop.f32.mrb[5].mxu0  ;;  %v1379_v59 = vpop.f32.mrb[5].mxu1 }
  0xf1   : > { %v357_v60 = vpop.f32.mrb[6].mxu0  ;;  %v462_v62 = vpop.f32.mrb[6].mxu1 }
  0xf2   : > { %v1560_v61 = vpack.c.bf16 %v357_v60, %v352_v56  ;;  %v1359_v63 = vpop.f32.mrb[7].mxu0  ;;  %v1566_v0 = vpack.c.bf16 %v462_v62, %v457_v57  ;;  %v1382_v1 = vpop.f32.mrb[7].mxu1 }
  0xf4   : > { %1561 = vmatpush3.bf16.msra.mxu0 %v1560_v61  ;;  %1567 = vmatpush3.bf16.msra.mxu1 %v1566_v0 }
  0xf5   : > { %v362_v2 = vpop.f32.mrb[8].mxu0  ;;  %1440 = vmatprep.subr.mxu0 %v1602_v11  ;;  %v467_v4 = vpop.f32.mrb[8].mxu1  ;;  %1465 = vmatprep.subr.mxu1 %v1602_v11 }
  0xf6   : > { %v1362_v5 = vpop.f32.mrb[9].mxu0  ;;  %v1385_v6 = vpop.f32.mrb[9].mxu1 }
  0xf8   : > { %1441 = vmatpush3.msk.msra.mxu0 %vm697_vm2, %v362_v2  ;;  %1466 = vmatpush3.msk.msra.mxu1 %vm697_vm2, %v467_v4 }
  0xf9   : > { %v552_v9 = vpop.f32.mrb[10].mxu0  ;;  %1568 = vmatprep.subr.bf16.mxu0 %v1600_v3  ;;  %v657_v10 = vpop.f32.mrb[10].mxu1  ;;  %1574 = vmatprep.subr.bf16.mxu1 %v1600_v3 }
  0xfa   : > { %v1396_v12 = vpop.f32.mrb[11].mxu0  ;;  %1443 = vmatmul.mubr.msk.f32.vlgmr.msra.gmra.mrb[20].mxu0 %vm681_vm3, %v224_v7  ;;  %v1419_v13 = vpop.f32.mrb[11].mxu1  ;;  %1468 = vmatmul.mubr.msk.f32.vlgmr.msra.gmra.mrb[20].mxu1 %vm681_vm3, %v229_v8 }
  0xfb   : > { %1445 = vmatprep.mubr.msk.f32.mxu0 %vm1601_vm0, %v1602_v11  ;;  %1470 = vmatprep.mubr.msk.f32.mxu1 %vm1601_vm0, %v1602_v11 }
  0xfd   : > { %v557_v16 = vpop.f32.mrb[12].mxu0  ;;  %v662_v18 = vpop.f32.mrb[12].mxu1 }
  0xfe   : > { %v1569_v17 = vpack.c.bf16 %v557_v16, %v552_v9  ;;  %v1399_v19 = vpop.f32.mrb[13].mxu0  ;;  %1446 = vmatmul.mubr.msk.f32.gmra.mrb[22].mxu0 %vm681_vm3, %v225_v14  ;;  %v1575_v20 = vpack.c.bf16 %v662_v18, %v657_v10  ;;  %v1422_v21 = vpop.f32.mrb[13].mxu1  ;;  %1471 = vmatmul.mubr.msk.f32.gmra.mrb[22].mxu1 %vm681_vm3, %v230_v15 }
  0xff   : > { %1448 = vmatprep.mubr.msk.f32.mxu0 %vm1601_vm0, %v1602_v11  ;;  %1473 = vmatprep.mubr.msk.f32.mxu1 %vm1601_vm0, %v1602_v11 }
 0x100   : > { %1570 = vmatpush3.bf16.msra.mxu0 %v1569_v17  ;;  %1576 = vmatpush3.bf16.msra.mxu1 %v1575_v20 }
 0x101   : > { %v562_v24 = vpop.f32.mrb[14].mxu0  ;;  %1571 = vmatprep.subr.bf16.mxu0 %v1600_v3  ;;  %v667_v25 = vpop.f32.mrb[14].mxu1  ;;  %1577 = vmatprep.subr.bf16.mxu1 %v1600_v3 }
 0x102   : > { %v1402_v26 = vpop.f32.mrb[15].mxu0  ;;  %1449 = vmatmul.mubr.msk.f32.gmra.mrb[24].mxu0 %vm681_vm3, %v226_v22  ;;  %v1425_v27 = vpop.f32.mrb[15].mxu1  ;;  %1474 = vmatmul.mubr.msk.f32.gmra.mrb[24].mxu1 %vm681_vm3, %v231_v23 }
 0x103   : > { %1451 = vmatprep.mubr.msk.f32.mxu0 %vm1601_vm0, %v1602_v11  ;;  %1476 = vmatprep.mubr.msk.f32.mxu1 %vm1601_vm0, %v1602_v11 }
 0x105   : > { %v567_v30 = vpop.f32.mrb[16].mxu0  ;;  %v672_v32 = vpop.f32.mrb[16].mxu1 }
 0x106   : > { %v1572_v31 = vpack.c.bf16 %v567_v30, %v562_v24  ;;  %v1405_v33 = vpop.f32.mrb[17].mxu0  ;;  %1452 = vmatmul.mubr.msk.f32.gmra.mrb[26].mxu0 %vm681_vm3, %v227_v28  ;;  %v1578_v3 = vpack.c.bf16 %v672_v32, %v667_v25  ;;  %v1428_v34 = vpop.f32.mrb[17].mxu1  ;;  %1477 = vmatmul.mubr.msk.f32.gmra.mrb[26].mxu1 %vm681_vm3, %v232_v29 }
 0x107   : > { %1454 = vmatprep.mubr.msk.f32.mxu0 %vm1601_vm0, %v1602_v11  ;;  %1479 = vmatprep.mubr.msk.f32.mxu1 %vm1601_vm0, %v1602_v11 }
 0x108   : > { %1573 = vmatpush3.bf16.msra.mxu0 %v1572_v31  ;;  %1579 = vmatpush3.bf16.msra.mxu1 %v1578_v3 }
 0x109   : > { %v572_v37 = vpop.f32.mrb[18].mxu0  ;;  %1490 = vmatprep.subr.mxu0 %v1602_v11  ;;  %v677_v39 = vpop.f32.mrb[18].mxu1  ;;  %1515 = vmatprep.subr.mxu1 %v1602_v11 }
 0x10a   : > { %v1408_v38 = vpop.f32.mrb[19].mxu0  ;;  %1455 = vmatmul.mubr.msk.f32.gmra.mrb[28].mxu0 %vm681_vm3, %v228_v35  ;;  %v1431_v40 = vpop.f32.mrb[19].mxu1  ;;  %1480 = vmatmul.mubr.msk.f32.gmra.mrb[28].mxu1 %vm681_vm3, %v233_v36 }
 0x10b   : > { %1492 = vmatprep.mubr.msk.f32.mxu0 %vm1601_vm0, %v1602_v11  ;;  %1517 = vmatprep.mubr.msk.f32.mxu1 %vm1601_vm0, %v1602_v11 }
 0x10c   : > { %1491 = vmatpush3.msk.msra.mxu0 %vm697_vm2, %v572_v37  ;;  %1516 = vmatpush3.msk.msra.mxu1 %vm697_vm2, %v677_v39 }
 0x10e   : > { %1493 = vmatmul.mubr.msk.f32.vlgmr.msra.gmra.mrb[30].mxu0 %vm681_vm3, %v234_v41  ;;  %1518 = vmatmul.mubr.msk.f32.vlgmr.msra.gmra.mrb[30].mxu1 %vm681_vm3, %v239_v42 }
 0x10f   : > { %1495 = vmatprep.mubr.msk.f32.mxu0 %vm1601_vm0, %v1602_v11  ;;  %1520 = vmatprep.mubr.msk.f32.mxu1 %vm1601_vm0, %v1602_v11 }
 0x112   : > { %1496 = vmatmul.mubr.msk.f32.gmra.mrb[32].mxu0 %vm681_vm3, %v235_v43  ;;  %1521 = vmatmul.mubr.msk.f32.gmra.mrb[32].mxu1 %vm681_vm3, %v240_v44 }
 0x113   : > { %1498 = vmatprep.mubr.msk.f32.mxu0 %vm1601_vm0, %v1602_v11  ;;  %1523 = vmatprep.mubr.msk.f32.mxu1 %vm1601_vm0, %v1602_v11 }
 0x116   : > { %1499 = vmatmul.mubr.msk.f32.gmra.mrb[34].mxu0 %vm681_vm3, %v236_v45  ;;  %1524 = vmatmul.mubr.msk.f32.gmra.mrb[34].mxu1 %vm681_vm3, %v241_v46 }
 0x117   : > { %1501 = vmatprep.mubr.msk.f32.mxu0 %vm1601_vm0, %v1602_v11  ;;  %1526 = vmatprep.mubr.msk.f32.mxu1 %vm1601_vm0, %v1602_v11 }
 0x11a   : > { %1502 = vmatmul.mubr.msk.f32.gmra.mrb[36].mxu0 %vm681_vm3, %v237_v47  ;;  %1527 = vmatmul.mubr.msk.f32.gmra.mrb[36].mxu1 %vm681_vm3, %v242_v48 }
 0x11b   : > { %1504 = vmatprep.mubr.msk.f32.mxu0 %vm1601_vm0, %v1602_v11  ;;  %1529 = vmatprep.mubr.msk.f32.mxu1 %vm1601_vm0, %v1602_v11 }
 0x11e   : > { %1505 = vmatmul.mubr.msk.f32.gmra.mrb[38].mxu0 %vm681_vm3, %v238_v49  ;;  %1530 = vmatmul.mubr.msk.f32.gmra.mrb[38].mxu1 %vm681_vm3, %v243_v50 }
 0x1cd   : > { %v767_v51 = vpop.f32.mrb[20].mxu0  ;;  %v875_v52 = vpop.f32.mrb[20].mxu1 }
 0x1ce   : > { %1116 = vst.msk [vmem:[%s1881_s30] sm:$0xff] %vm1115_vm4, %v767_v51  ;;  %v1444_v11 = vpop.f32.mrb[21].mxu0  ;;  %1122 = vst.msk [vmem:[%s1881_s30 + $0x28] sm:$0xff] %vm1115_vm4, %v875_v52  ;;  %v1469_v53 = vpop.f32.mrb[21].mxu1 }
 0x1d1   : > { %v772_v54 = vpop.f32.mrb[22].mxu0  ;;  %v880_v56 = vpop.f32.mrb[22].mxu1 }
 0x1d2   : > { %1117 = vst.msk [vmem:[%s1881_s30 + $0x8] sm:$0xff] %vm1115_vm4, %v772_v54  ;;  %v1447_v55 = vpop.f32.mrb[23].mxu0  ;;  %1123 = vst.msk [vmem:[%s1881_s30 + $0x30] sm:$0xff] %vm1115_vm4, %v880_v56  ;;  %v1472_v57 = vpop.f32.mrb[23].mxu1 }
 0x1d5   : > { %v777_v58 = vpop.f32.mrb[24].mxu0  ;;  %v885_v60 = vpop.f32.mrb[24].mxu1 }
 0x1d6   : > { %1118 = vst.msk [vmem:[%s1881_s30 + $0x10] sm:$0xff] %vm1115_vm4, %v777_v58  ;;  %v1450_v59 = vpop.f32.mrb[25].mxu0  ;;  %1124 = vst.msk [vmem:[%s1881_s30 + $0x38] sm:$0xff] %vm1115_vm4, %v885_v60  ;;  %v1475_v61 = vpop.f32.mrb[25].mxu1 }
 0x1d9   : > { %v782_v62 = vpop.f32.mrb[26].mxu0  ;;  %v890_v0 = vpop.f32.mrb[26].mxu1 }
 0x1da   : > { %1119 = vst.msk [vmem:[%s1881_s30 + $0x18] sm:$0xff] %vm1115_vm4, %v782_v62  ;;  %v1453_v63 = vpop.f32.mrb[27].mxu0  ;;  %1125 = vst.msk [vmem:[%s1881_s30 + $0x40] sm:$0xff] %vm1115_vm4, %v890_v0  ;;  %v1478_v1 = vpop.f32.mrb[27].mxu1 }
 0x1dd   : > { %v787_v2 = vpop.f32.mrb[28].mxu0  ;;  %v895_v5 = vpop.f32.mrb[28].mxu1 }
 0x1de   : > { %1121 = vst.msk [vmem:[%s1881_s30 + $0x20] sm:$0x3] %vm1120_vm5, %v787_v2  ;;  %v1456_v4 = vpop.f32.mrb[29].mxu0  ;;  %1126 = vst.msk [vmem:[%s1881_s30 + $0x48] sm:$0x3] %vm1120_vm5, %v895_v5  ;;  %v1481_v6 = vpop.f32.mrb[29].mxu1 }
 0x1e1   : > { %v983_v7 = vpop.f32.mrb[30].mxu0  ;;  %v1091_v9 = vpop.f32.mrb[30].mxu1 }
 0x1e2   : > { %1127 = vst.msk [vmem:[%s1881_s30 + $0x50] sm:$0xff] %vm1115_vm4, %v983_v7  ;;  %v1494_v8 = vpop.f32.mrb[31].mxu0  ;;  %1132 = vst.msk [vmem:[%s1881_s30 + $0x78] sm:$0xff] %vm1115_vm4, %v1091_v9  ;;  %v1519_v10 = vpop.f32.mrb[31].mxu1 }
 0x1e5   : > { %v988_v12 = vpop.f32.mrb[32].mxu0  ;;  %v1096_v14 = vpop.f32.mrb[32].mxu1 }
 0x1e6   : > { %1128 = vst.msk [vmem:[%s1881_s30 + $0x58] sm:$0xff] %vm1115_vm4, %v988_v12  ;;  %v1497_v13 = vpop.f32.mrb[33].mxu0  ;;  %1133 = vst.msk [vmem:[%s1881_s30 + $0x80] sm:$0xff] %vm1115_vm4, %v1096_v14  ;;  %v1522_v15 = vpop.f32.mrb[33].mxu1 }
 0x1e9   : > { %v993_v16 = vpop.f32.mrb[34].mxu0  ;;  %v1101_v18 = vpop.f32.mrb[34].mxu1 }
 0x1ea   : > { %1129 = vst.msk [vmem:[%s1881_s30 + $0x60] sm:$0xff] %vm1115_vm4, %v993_v16  ;;  %v1500_v17 = vpop.f32.mrb[35].mxu0  ;;  %1134 = vst.msk [vmem:[%s1881_s30 + $0x88] sm:$0xff] %vm1115_vm4, %v1101_v18  ;;  %v1525_v19 = vpop.f32.mrb[35].mxu1 }
 0x1ed   : > { %v998_v20 = vpop.f32.mrb[36].mxu0  ;;  %v1106_v22 = vpop.f32.mrb[36].mxu1 }
 0x1ee   : > { %1130 = vst.msk [vmem:[%s1881_s30 + $0x68] sm:$0xff] %vm1115_vm4, %v998_v20  ;;  %v1503_v21 = vpop.f32.mrb[37].mxu0  ;;  %1135 = vst.msk [vmem:[%s1881_s30 + $0x90] sm:$0xff] %vm1115_vm4, %v1106_v22  ;;  %v1528_v23 = vpop.f32.mrb[37].mxu1 }
 0x1f1   : > { %v1003_v24 = vpop.f32.mrb[38].mxu0  ;;  %v1111_v26 = vpop.f32.mrb[38].mxu1 }
 0x1f2   : > { %1131 = vst.msk [vmem:[%s1881_s30 + $0x70] sm:$0x3] %vm1120_vm5, %v1003_v24  ;;  %v1506_v25 = vpop.f32.mrb[39].mxu0  ;;  %1136 = vst.msk [vmem:[%s1881_s30 + $0x98] sm:$0x3] %vm1120_vm5, %v1111_v26  ;;  %v1531_v27 = vpop.f32.mrb[39].mxu1 }
 0x1f3 PF: > { %s13_s12 = sadd.s32 1, %s1598_s12  }
 0x1f4   : > { %p10_p4 = scmp.ge.s32.totalorder %s13_s12, 4  }
 0x1f6   :  { %12 = sbr.rel (!%p10_p4) target bundleno = 1 (0x1), region = 65 }

</bundles_post_ra>
